<compile_context>
chip_gen: v7x
topology: tpu7x:2x2x1
jax: 0.10.0
libtpu: 0.0.40
codegen_flags: <defaults>
</compile_context>

<pallas_src>
import functools

import jax
import jax.numpy as jnp
from jax.experimental import pallas as pl
from jax.experimental.pallas import tpu as pltpu


def _round_up(x, m):
    return (x + m - 1) // m * m


# ------------------------------- kernels -------------------------------------

def _pe_kernel_nonorm(x_ref, w_ref, b_ref, o_ref):
    # x_ref: (tm, K) compute dtype, w_ref: (K, E_pad) compute dtype, b_ref: (1, E_pad) f32
    y = jnp.dot(x_ref[...], w_ref[...], preferred_element_type=jnp.float32)
    o_ref[...] = (y + b_ref[...]).astype(o_ref.dtype)


def _pe_kernel_norm(x_ref, w_ref, b_ref, g_ref, bt_ref, o_ref, *, e_true, eps):
    # Fused LayerNorm over the true E lanes.  Padded lanes of y are exactly zero
    # (zero-padded weight and bias), so full-width sums divided by e_true are exact
    # and no lane mask is needed.  Single pass: mean and E[y^2], variance clamped.
    y = jnp.dot(x_ref[...], w_ref[...], preferred_element_type=jnp.float32)
    y = y + b_ref[...]
    inv_e = 1.0 / float(e_true)
    mu = jnp.sum(y, axis=-1, keepdims=True) * inv_e
    ms = jnp.sum(y * y, axis=-1, keepdims=True) * inv_e
    var = jnp.maximum(ms - mu * mu, 0.0)          # guard f32 cancellation -> no NaN
    y = (y - mu) * jax.lax.rsqrt(var + eps)
    # Padded gamma/beta lanes are zero -> padded output lanes are zero.
    o_ref[...] = (y * g_ref[...] + bt_ref[...]).astype(o_ref.dtype)


# ------------------------------- wrapper --------------------------------------

def _vmem_budget():
    """Generation-aware (budget, vmem_limit_bytes) pair."""
    try:
        cap = int(pltpu.get_tpu_info().vmem_capacity_bytes)
    except Exception:
        cap = 64 << 20                              # conservative: v7x per-TC VMEM
    budget = min(48 << 20, (cap * 3) // 8)          # v5e/v6e -> 48 MiB, v7x -> 24 MiB
    limit = min((cap * 3) // 4, budget + (16 << 20))  # headroom for Mosaic scratch
    return budget, limit


def _choose_row_tiling(M, ra, tm_cap):
    """Pick (tm, M_pad, grid_m). ra = row alignment (16 for bf16, 8 for f32)."""
    tm_cap = max(ra, tm_cap // ra * ra)
    # Small problems: single block -> no forced split (saves the ~0.35us/step overhead
    # on single-TC v5e/v6e), no row padding, no post-kernel row slice.
    if M <= 1024 and _round_up(M, ra) <= tm_cap:
        tm = _round_up(M, ra)
        return tm, tm, 1
    nb = max(2, pl.cdiv(M, tm_cap))
    if nb % 2:
        nb += 1                                     # even grid: balanced v7x megacore
    tm = min(tm_cap, _round_up(pl.cdiv(M, nb), ra))
    M_pad = _round_up(M, tm)
    return tm, M_pad, M_pad // tm


def patch_embed_forward(x, weight, bias, *, patch_size, gamma=None, beta=None,
                        eps=1e-5, data_format="NCHW",
                        compute_dtype=jnp.bfloat16, out_dtype=None, tm_max=512):
    """PatchEmbed forward.

    x: (B, C, H, W) for data_format="NCHW" (PyTorch layout) or (B, H, W, C) for "NHWC".
    weight: (E, C, ph, pw), bias: (E,).  gamma/beta: (E,) enable the fused LayerNorm.
    compute_dtype: MXU operand dtype (bf16 default; accumulation/norm math stays f32).
    Returns (B, Ho*Wo, E) in out_dtype (default: x.dtype).
    """
    if data_format == "NCHW":
        B, C, H, W = x.shape
    elif data_format == "NHWC":
        B, H, W, C = x.shape
    else:
        raise ValueError(f"unknown data_format {data_format!r}")
    ph = pw = patch_size
    assert H % ph == 0 and W % pw == 0
    Ho, Wo = H // ph, W // pw
    E = weight.shape[0]
    K = C * ph * pw
    M = B * Ho * Wo
    out_dtype = jnp.dtype(x.dtype if out_dtype is None else out_dtype)
    compute_dtype = jnp.dtype(compute_dtype)
    apply_norm = gamma is not None

    # Only the embed dim is padded (lane-dense, unmasked stores).  K stays un-padded:
    # a full-extent dim is a legal block dim and the MXU handles K < 128.
    E_pad = _round_up(E, 128)

    cs = compute_dtype.itemsize
    osz = out_dtype.itemsize
    ra = 16 if cs < 4 else 8                        # bf16 packs 2 rows per sublane

    budget, vmem_limit = _vmem_budget()
    fixed = K * E_pad * cs + 4 * E_pad * 4          # single-buffered weight + vectors
    per_row = 2 * (K * cs + E_pad * osz)            # double-buffered LHS + output rows
    avail = max(budget - fixed, per_row * ra)
    tm_cap = min(tm_max, max(ra, (avail // per_row) // ra * ra))
    tm, M_pad, grid_m = _choose_row_tiling(M, ra, tm_cap)

    # ---- patchify (wrapper-side XLA copy; feature order matched by the weight) ----
    if data_format == "NCHW":
        # feature order (C, ph, pw) == PyTorch conv-weight flattening
        patches = (x.reshape(B, C, Ho, ph, Wo, pw)
                     .transpose(0, 2, 4, 1, 3, 5)
                     .reshape(M, K))
        w2 = weight.reshape(E, K).T                 # (K, E)
    else:
        # NHWC: only a ph <-> Wo swap; (C,ph,pw)->(ph,pw,C) folded into the weight permute
        patches = (x.reshape(B, Ho, ph, Wo, pw, C)
                     .transpose(0, 1, 3, 2, 4, 5)
                     .reshape(M, K))
        w2 = weight.transpose(2, 3, 1, 0).reshape(K, E)
    patches = patches.astype(compute_dtype)
    if M_pad != M:
        patches = jnp.pad(patches, ((0, M_pad - M), (0, 0)))

    w2 = w2.astype(compute_dtype)
    if E_pad != E:
        w2 = jnp.pad(w2, ((0, 0), (0, E_pad - E)))
    b2 = jnp.pad(bias.astype(jnp.float32).reshape(1, E), ((0, 0), (0, E_pad - E)))

    # Weight / bias / gamma / beta never change across the grid -> single-buffer them.
    const_mode = pl.Buffered(1)
    in_specs = [
        pl.BlockSpec((tm, K), lambda i: (i, 0)),
        pl.BlockSpec((K, E_pad), lambda i: (0, 0), pipeline_mode=const_mode),
        pl.BlockSpec((1, E_pad), lambda i: (0, 0), pipeline_mode=const_mode),
    ]
    operands = [patches, w2, b2]

    if apply_norm:
        g2 = jnp.pad(gamma.astype(jnp.float32).reshape(1, E), ((0, 0), (0, E_pad - E)))
        bt2 = jnp.pad(beta.astype(jnp.float32).reshape(1, E), ((0, 0), (0, E_pad - E)))
        in_specs += [pl.BlockSpec((1, E_pad), lambda i: (0, 0), pipeline_mode=const_mode),
                     pl.BlockSpec((1, E_pad), lambda i: (0, 0), pipeline_mode=const_mode)]
        operands += [g2, bt2]
        kernel = functools.partial(_pe_kernel_norm, e_true=E, eps=eps)
    else:
        kernel = _pe_kernel_nonorm

    bytes_accessed = (M_pad * K * cs + K * E_pad * cs
                      + (3 if apply_norm else 1) * E_pad * 4
                      + M_pad * E_pad * osz)
    cost = pl.CostEstimate(flops=2 * M * K * E,
                           transcendentals=M if apply_norm else 0,
                           bytes_accessed=bytes_accessed)

    out = pl.pallas_call(
        kernel,
        out_shape=jax.ShapeDtypeStruct((M_pad, E_pad), out_dtype),
        grid_spec=pltpu.PrefetchScalarGridSpec(
            num_scalar_prefetch=0,
            grid=(grid_m,),
            in_specs=in_specs,
            out_specs=pl.BlockSpec((tm, E_pad), lambda i: (i, 0)),
        ),
        compiler_params=pltpu.CompilerParams(
            dimension_semantics=("parallel",),
            vmem_limit_bytes=int(vmem_limit)),
        cost_estimate=cost,
    )(*operands)

    if M_pad != M or E_pad != E:
        # TODO(synk): when E_pad != E, a consumer that accepts the padded width would
        # avoid this extra output round trip entirely.
        out = out[:M, :E]
    return out.reshape(B, Ho * Wo, E)


# ------------------------------- reference ------------------------------------

def _reference(x, weight, bias, *, patch_size, gamma=None, beta=None, eps=1e-5):
    p = patch_size
    y = jax.lax.conv_general_dilated(
        x, weight, window_strides=(p, p), padding="VALID",
        dimension_numbers=("NCHW", "OIHW", "NCHW"))
    y = y + bias[None, :, None, None]
    B, E = y.shape[0], y.shape[1]
    y = y.reshape(B, E, -1).transpose(0, 2, 1)      # flatten(2).transpose(1, 2)
    if gamma is not None:
        mu = jnp.mean(y, axis=-1, keepdims=True)
        var = jnp.mean((y - mu) ** 2, axis=-1, keepdims=True)
        y = (y - mu) / jnp.sqrt(var + eps)
        y = y * gamma + beta
    return y


if __name__ == "__main__":
    # Small config consistent with the module: img 16x16, patch 4, in_chans 4, embed_dim 32.
    B, C, H, W = 2, 4, 16, 16
    patch_size = 4
    embed_dim = 32

    key = jax.random.PRNGKey(0)
    kx, kw, kb, kg, kbt = jax.random.split(key, 5)
    x = jax.random.normal(kx, (B, C, H, W), dtype=jnp.float32)
    weight = jax.random.normal(kw, (embed_dim, C, patch_size, patch_size),
                               dtype=jnp.float32) * 0.05
    bias = jax.random.normal(kb, (embed_dim,), dtype=jnp.float32) * 0.05
    gamma = 1.0 + 0.1 * jax.random.normal(kg, (embed_dim,), dtype=jnp.float32)
    beta = 0.1 * jax.random.normal(kbt, (embed_dim,), dtype=jnp.float32)

    ref = _reference(x, weight, bias, patch_size=patch_size)
    ref_n = _reference(x, weight, bias, patch_size=patch_size, gamma=gamma, beta=beta)

    # 1) Default module config (norm_layer=None), default bf16 MXU path.
    out = jax.block_until_ready(patch_embed_forward(x, weight, bias, patch_size=patch_size))
    assert out.shape == (B, (H // patch_size) * (W // patch_size), embed_dim)
    assert jnp.allclose(out, ref, atol=2e-2, rtol=2e-2)

    # 2) Explicit f32 compute path -- matches the conv reference tightly.
    out_f32 = jax.block_until_ready(
        patch_embed_forward(x, weight, bias, patch_size=patch_size,
                            compute_dtype=jnp.float32))
    assert jnp.allclose(out_f32, ref, atol=1e-4, rtol=1e-4)

    # 3) norm_layer=nn.LayerNorm (usual focal-transformer config), fused in-kernel.
    out_n = jax.block_until_ready(
        patch_embed_forward(x, weight, bias, patch_size=patch_size, gamma=gamma, beta=beta))
    assert jnp.allclose(out_n, ref_n, atol=4e-2, rtol=4e-2)

    out_n32 = jax.block_until_ready(
        patch_embed_forward(x, weight, bias, patch_size=patch_size, gamma=gamma, beta=beta,
                            compute_dtype=jnp.float32))
    assert jnp.allclose(out_n32, ref_n, atol=1e-4, rtol=1e-4)

    # 4) NHWC input path (cheaper wrapper reorder) -- identical semantics.
    x_nhwc = jnp.transpose(x, (0, 2, 3, 1))
    out_nhwc = jax.block_until_ready(
        patch_embed_forward(x_nhwc, weight, bias, patch_size=patch_size,
                            gamma=gamma, beta=beta, data_format="NHWC"))
    assert jnp.allclose(out_nhwc, ref_n, atol=4e-2, rtol=4e-2)

    # 5) bf16 output (halves writeback bytes; accumulation / LayerNorm math stays f32).
    out_bf = jax.block_until_ready(
        patch_embed_forward(x, weight, bias, patch_size=patch_size, gamma=gamma, beta=beta,
                            out_dtype=jnp.bfloat16))
    assert jnp.allclose(out_bf.astype(jnp.float32), ref_n, atol=7e-2, rtol=7e-2)

    print("KERNEL_OK")
</pallas_src>

<mosaic_0001>
module attributes {stable_mosaic.version = 11 : i64} {
  func.func @_pe_kernel_nonorm(%arg0: i32, %arg1: memref<32x64xbf16, #tpu.memory_space<vmem>>, %arg2: memref<64x128xbf16, #tpu.memory_space<vmem>>, %arg3: memref<1x128xf32, #tpu.memory_space<vmem>>, %arg4: memref<32x128xf32, #tpu.memory_space<vmem>>) attributes {dimension_semantics = [#tpu.dimension_semantics<parallel>], iteration_bounds = array<i64: 1>, scalar_prefetch = 0 : i64, scratch_operands = 0 : i64, tpu.core_type = #tpu.core_type<tc>, window_params = [{transform_indices = @transform_0, window_bounds = array<i64: 32, 64>}, {pipeline_mode = #tpu.pipeline_mode<synchronous>, transform_indices = @transform_1, window_bounds = array<i64: 64, 128>}, {pipeline_mode = #tpu.pipeline_mode<synchronous>, transform_indices = @transform_2, window_bounds = array<i64: 1, 128>}, {transform_indices = @transform_3, window_bounds = array<i64: 32, 128>}]} {
    %c0 = arith.constant 0 : index
    %c0_0 = arith.constant 0 : index
    %0 = vector.load %arg1[%c0, %c0_0] : memref<32x64xbf16, #tpu.memory_space<vmem>>, vector<32x64xbf16>
    %c0_1 = arith.constant 0 : index
    %c0_2 = arith.constant 0 : index
    %1 = vector.load %arg2[%c0_1, %c0_2] : memref<64x128xbf16, #tpu.memory_space<vmem>>, vector<64x128xbf16>
    %cst = arith.constant dense<0.000000e+00> : vector<32x128xf32>
    %2 = tpu.matmul %0, %1, %cst {dimension_numbers = #tpu.dot_dimension_numbers<[1], [0], [0], [1], [0, 0, 1, 1], [], []>} : vector<32x64xbf16>, vector<64x128xbf16>, vector<32x128xf32> -> vector<32x128xf32>
    %c0_3 = arith.constant 0 : index
    %c0_4 = arith.constant 0 : index
    %3 = vector.load %arg3[%c0_3, %c0_4] : memref<1x128xf32, #tpu.memory_space<vmem>>, vector<1x128xf32>
    %4 = vector.broadcast %3 : vector<1x128xf32> to vector<32x128xf32>
    %5 = arith.addf %2, %4 : vector<32x128xf32>
    %c0_5 = arith.constant 0 : index
    %c0_6 = arith.constant 0 : index
    %6 = vector.load %arg4[%c0_5, %c0_6] : memref<32x128xf32, #tpu.memory_space<vmem>>, vector<32x128xf32>
    tpu.vector_store %arg4[%c0_5, %c0_6], %5 {strides = array<i32>} : memref<32x128xf32, #tpu.memory_space<vmem>>, vector<32x128xf32>,
    return
  }
  func.func @transform_0(%arg0: i32) -> (i32, i32) {
    %c0_i32 = arith.constant 0 : i32
    %c0_i32_0 = arith.constant 0 : i32
    return %arg0, %c0_i32 : i32, i32
  }
  func.func @transform_1(%arg0: i32) -> (i32, i32) {
    %c0_i32 = arith.constant 0 : i32
    %c0_i32_0 = arith.constant 0 : i32
    %c0_i32_1 = arith.constant 0 : i32
    return %c0_i32, %c0_i32_0 : i32, i32
  }
  func.func @transform_2(%arg0: i32) -> (i32, i32) {
    %c0_i32 = arith.constant 0 : i32
    %c0_i32_0 = arith.constant 0 : i32
    %c0_i32_1 = arith.constant 0 : i32
    return %c0_i32, %c0_i32_0 : i32, i32
  }
  func.func @transform_3(%arg0: i32) -> (i32, i32) {
    %c0_i32 = arith.constant 0 : i32
    %c0_i32_0 = arith.constant 0 : i32
    return %arg0, %c0_i32 : i32, i32
  }
}

</mosaic_0001>

<bundles_post_ra>
// kernel: tpu_custom_call.1
= control target key start
LH: loop header
LB: loop body
LE: loop exit
PB: predicated region body
PF: predicated region fallthrough
CT: control target
= control target key end

     0   :  { %8 = vsyncpa [#allocation3], 0  ;;  %s353_s0 = inlined_call_operand.hbm [shape: bf16[32,64], index: 0, kind: input, shape index: {}]   ;;  %s354_s1 = inlined_call_operand.hbm [shape: bf16[64,128], index: 1, kind: input, shape index: {}]   ;;  %s355_s2 = inlined_call_operand.vmem [shape: f32[1,128], index: 2, kind: input, shape index: {}]   ;;  %s356_s3 = inlined_call_operand.hbm [shape: f32[32,128], index: 3, kind: output, shape index: {}]  }
   0x1   :  { %9 = vsyncpa [#allocation6], 0 }
   0x2   :  { %10 = vsyncpa [#allocation4], 0  ;;  %s287_s12 = smov [#allocation2]   ;;  %s215_s16 = scalar_lea.hbm %s353_s0, 256 }
   0x3   :  { %s16_s13 = sshll.u32 %s287_s12, 4  ;;  %p216_p0 = scmp.ne.s32.totalorder %s353_s0, %s215_s16  ;;  %s17_s13 = int_to_ptr.vmem [resolvable:$true] %s16_s13 }
   0x4   :  { %p219_p1 = scmp.lt.u32.totalorder %s215_s16, %s353_s0 }
   0x6   :  { %p221_p2 = pnand %p219_p1, %p216_p0 }
   0x8   :  { %224 = shalt.err (!%p221_p2)
}
   0x9   :  { %s225_s21 = scalar_lea.vmem %s17_s13, 256  ;;  %p230_p4 = scmp.lt.s32.totalorder %s17_s13, %s17_s13 }
   0xa   :  { %p226_p3 = scmp.ne.s32.totalorder %s17_s13, %s225_s21  ;;  %p231_p5 = scmp.lt.s32.totalorder %s225_s21, %s225_s21 }
   0xc   :  { %p232_p6 = por %p231_p5, %p230_p4 }
   0xe   :  { %p233_p7 = pnand %p232_p6, %p226_p3 }
  0x10   :  { %236 = shalt.err (!%p233_p7)
}
  0x11   :  { %s288_s22 = smov 64   ;;  %s289_s23 = smov 4  }
  0x12   :  { %22 = dma.hbm_to_vmem [thread:$0]  %s353_s0, 256, %s17_s13, [#allocation3], %s288_s22, %s288_s22, %s289_s23  }
  0x13   :  { %s290_s26 = smov [#allocation5]   ;;  %s237_s30 = scalar_lea.hbm %s354_s1, 512 }
  0x14   :  { %s28_s27 = sshll.u32 %s290_s26, 4  ;;  %p238_p8 = scmp.ne.s32.totalorder %s354_s1, %s237_s30  ;;  %s29_s27 = int_to_ptr.vmem [resolvable:$true] %s28_s27 }
  0x15   :  { %p241_p9 = scmp.lt.u32.totalorder %s237_s30, %s354_s1 }
  0x17   :  { %p243_p10 = pnand %p241_p9, %p238_p8 }
  0x19   :  { %246 = shalt.err (!%p243_p10)
}
  0x1a   :  { %s247_s8 = scalar_lea.vmem %s29_s27, 512  ;;  %p252_p12 = scmp.lt.s32.totalorder %s29_s27, %s29_s27 }
  0x1b   :  { %p248_p11 = scmp.ne.s32.totalorder %s29_s27, %s247_s8  ;;  %p253_p13 = scmp.lt.s32.totalorder %s247_s8, %s247_s8 }
  0x1d   :  { %p254_p0 = por %p253_p13, %p252_p12 }
  0x1f   :  { %p255_p1 = pnand %p254_p0, %p248_p11 }
  0x21   :  { %258 = shalt.err (!%p255_p1)
}
  0x22   :  { %34 = dma.hbm_to_vmem [thread:$0]  %s354_s1, 512, %s29_s27, [#allocation6], %s288_s22, %s288_s22, %s289_s23  }
  0x23   :  { %281 = dma.done.wait [#allocation3], 256  }
  0x24   :  { %282 = vsyncadd [#allocation3], 4294967040 }
  0x25   :  { %283 = dma.done.wait [#allocation6], 512  }
  0x26   :  { %284 = vsyncadd [#allocation6], 4294966784  ;;  %v209_v0 = vld [vmem:[#allocation5] sm:$0xff]   ;;  %v210_v1 = vld [vmem:[#allocation5 + $0x8] sm:$0xff]   ;;  %vm97_vm0 = vcmask 523264   ;;  %s291_s11 = smov [#allocation7]  }
  0x27   :  { %190 = vmatprep.subr.bf16.mxu0 %v209_v0  ;;  %v211_v2 = vld [vmem:[#allocation5 + $0x10] sm:$0xff]   ;;  %v212_v4 = vld [vmem:[#allocation5 + $0x18] sm:$0xff]   ;;  %s162_s12 = sshll.u32 %s291_s11, 4  ;;  %s163_s12 = int_to_ptr.vmem [resolvable:$true] %s162_s12 }
  0x28   :  { %191 = vmatpush3.bf16.msra.mxu0 %v209_v0  ;;  %v213_v3 = vld [vmem:[#allocation2] sm:$0xff]   ;;  %v214_v5 = vld [vmem:[#allocation2 + $0x8] sm:$0xff]   ;;  %s259_s13 = scalar_lea.vmem %s163_s12, 512  ;;  %p264_p3 = scmp.lt.s32.totalorder %s163_s12, %s163_s12 }
  0x29   :  { %192 = vmatprep.subr.bf16.mxu0 %v210_v1  ;;  %198 = vmatprep.mubr.msk.bf16.mxu0 %vm97_vm0, %v213_v3  ;;  %v175_v6 = vld [vmem:[%s355_s2] ss:$0 sm:$0xff]  ;;  %p260_p2 = scmp.ne.s32.totalorder %s163_s12, %s259_s13  ;;  %p265_p4 = scmp.lt.s32.totalorder %s259_s13, %s259_s13 }
  0x2b   :  { %p266_p5 = por %p265_p4, %p264_p3 }
  0x2c   :  { %193 = vmatpush3.bf16.msra.mxu0 %v210_v1 }
  0x2d   :  { %194 = vmatprep.subr.bf16.mxu0 %v211_v2  ;;  %p267_p6 = pnand %p266_p5, %p260_p2 }
  0x30   :  { %195 = vmatpush3.bf16.msra.mxu0 %v211_v2 }
  0x31   :  { %196 = vmatprep.subr.bf16.mxu0 %v212_v4 }
  0x34   :  { %197 = vmatpush3.bf16.msra.mxu0 %v212_v4 }
  0x37   :  { %199 = vmatmul.mubr.msk.bf16.vlgmr.msra.gmra.mrb[0].mxu0 %vm97_vm0, %v214_v5 }
 0x10a   :  { %v200_v7 = vpop.f32.mrb[0].mxu0 }
 0x10b   :  { %v147_v8 = vadd.f32 %v200_v7, %v175_v6  ;;  %v138_v9 = vpop.f32.mrb[1].mxu0 }
 0x10c   :  { %v139_v10 = vadd.f32 %v175_v6, %v138_v9  ;;  %v201_v11 = vpop.f32.mrb[2].mxu0 }
 0x10d   :  { %155 = vst [vmem:[#allocation7 + $0x10] sm:$0xff] %v147_v8  ;;  %v150_v12 = vadd.f32 %v201_v11, %v175_v6  ;;  %v141_v13 = vpop.f32.mrb[3].mxu0 }
 0x10e   :  { %153 = vst [vmem:[#allocation7] sm:$0xff] %v139_v10  ;;  %v142_v14 = vadd.f32 %v175_v6, %v141_v13 }
 0x10f   :  { %156 = vst [vmem:[#allocation7 + $0x18] sm:$0xff] %v150_v12 }
 0x110   :  { %154 = vst [vmem:[#allocation7 + $0x8] sm:$0xff] %v142_v14 }
 0x111   :  { %270 = shalt.err (!%p267_p6)
}
 0x112   :  { %s271_s15 = scalar_lea.hbm %s356_s3, 512 }
 0x113   :  { %p272_p7 = scmp.ne.s32.totalorder %s356_s3, %s271_s15  ;;  %p275_p8 = scmp.lt.u32.totalorder %s271_s15, %s356_s3 }
 0x115   :  { %p277_p9 = pnand %p275_p8, %p272_p7 }
 0x117   :  { %280 = shalt.err (!%p277_p9)
}
 0x118   :  { %s292_s20 = smov 128   ;;  %s293_s21 = smov 8  }
 0x119   :  { %168 = dma.vmem_to_hbm [thread:$0]  %s163_s12, 512, %s356_s3, [#allocation4], %s292_s20, %s292_s20, %s293_s21  }
 0x11a   :  { %285 = dma.done.wait [#allocation4], 512  }
 0x11b   :  { %286 = vsyncadd [#allocation4], 4294966784 }
 0x11c   :  { %172 = vsyncpa [#allocation3], 1 }
 0x11d   :  { %173 = vsyncpa [#allocation6], 1 }
 0x11e   :  { %174 = vsyncpa [#allocation4], 1 }

</bundles_post_ra>
